<compile_context>
chip_gen: v6e
topology: v6e:2x2x1
jax: 0.10.0
libtpu: 0.0.40
codegen_flags: <defaults>
</compile_context>

<pallas_src>
import functools

import jax
import jax.numpy as jnp
from jax.experimental import pallas as pl
from jax.experimental.pallas import tpu as pltpu

NUM_CLASSES = 10
P = 0.5
ALPHA = 1.0

_LANE = 128
_MIN_TILE_D = 512                      # keep per-row DMA chunks >= 2 KiB (f32)
_MAX_TILE_D = 8192
_VMEM_LIMIT_BYTES = 32 * 1024 * 1024   # explicit scoped-VMEM limit (v5e default is 16 MiB)
_WORKING_SET_BYTES = 24 * 1024 * 1024  # soft budget for double-buffered in+out tiles


def _cdiv(a: int, b: int) -> int:
    return (a + b - 1) // b


def _mixup_image_kernel(lam_ref, x_ref, x_out_ref):
    # lam_ref:   SMEM (1,) f32           -- effective mixup lambda (1.0 == "skip")
    # x_ref:     VMEM (B, TILE_D) float  -- one lane-dense tile of the flat batch
    # x_out_ref: VMEM (B, TILE_D) float  -- aliased with the input in HBM
    lam = lam_ref[0]

    @pl.when(lam == 1.0)
    def _():
        # Skip branch (prob 1-p): exact identity, also bit-exact for inf/NaN.
        x_out_ref[...] = x_ref[...]

    @pl.when(lam != 1.0)
    def _():
        x = x_ref[...]
        # result[i] = x[i-1]  == torch.roll(x, 1, 0); XLU op, off the VPU slots.
        x_rolled = pltpu.roll(x, shift=1, axis=0)
        lam_c = lam.astype(x.dtype)  # keep the blend in the input dtype (no f32 promotion)
        # one fewer vmul than lam*x + (1-lam)*x_rolled
        x_out_ref[...] = (x_rolled + lam_c * (x - x_rolled)).astype(x_out_ref.dtype)


def _pick_tile_d(batch_size: int, d: int, itemsize: int) -> int:
    """Widest 128-aligned tile whose double-buffered in+out tiles fit the VMEM budget."""
    d_128 = _cdiv(d, _LANE) * _LANE
    # 2 input buffers + 2 output buffers per pipelined tile.
    soft = _WORKING_SET_BYTES // (4 * batch_size * itemsize)
    hard = (_VMEM_LIMIT_BYTES - (2 << 20)) // (4 * batch_size * itemsize)
    soft = max(_LANE, (soft // _LANE) * _LANE)
    hard = max(_LANE, (hard // _LANE) * _LANE)

    tile = min(_MAX_TILE_D, soft, d_128)
    # v5e: keep per-row DMA chunks large enough, as long as the hard budget allows it.
    tile = max(tile, min(_MIN_TILE_D, d_128, hard))
    # v7x megacore: keep at least 2 grid steps so both TensorCores stream.
    if d_128 >= 2 * _LANE and _cdiv(d, tile) < 2:
        tile = _cdiv(_cdiv(d, 2), _LANE) * _LANE
    return max(_LANE, tile)


@functools.partial(jax.jit, static_argnames=("num_classes",), donate_argnums=(0,))
def random_mixup(batch, target, lam_eff, *, num_classes=NUM_CLASSES):
    """batch: (B, C, H, W) float (donated); target: (B,) int; lam_eff: scalar f32."""
    B, C, H, W = batch.shape
    D = C * H * W
    itemsize = jnp.dtype(batch.dtype).itemsize

    tile_d = _pick_tile_d(B, D, itemsize)
    num_tiles = _cdiv(D, tile_d)  # partial final block is masked by Pallas (no pad / no slice)

    x2d = batch.reshape(B, D)     # bitcast reshape; aliases the donated buffer
    lam_arr = jnp.reshape(lam_eff.astype(jnp.float32), (1,))

    # --- streamed image mixup: 1-D grid over the lane (pixel) axis ---
    out_x = pl.pallas_call(
        _mixup_image_kernel,
        grid=(num_tiles,),
        in_specs=[
            pl.BlockSpec(memory_space=pltpu.SMEM),            # lambda scalar
            pl.BlockSpec((B, tile_d), lambda d: (0, d)),       # image tile
        ],
        out_specs=pl.BlockSpec((B, tile_d), lambda d: (0, d)),
        out_shape=jax.ShapeDtypeStruct((B, D), batch.dtype),
        input_output_aliases={1: 0},                           # true in-place (batch donated)
        compiler_params=pltpu.CompilerParams(
            dimension_semantics=("parallel",),                 # megacore sharding on v7x
            vmem_limit_bytes=_VMEM_LIMIT_BYTES,
        ),
    )(lam_arr, x2d)

    # --- tiny (B, num_classes) target one-hot + blend: plain jnp, fused by XLA ---
    # One-hots contain only 0/1, so the folded lam==1.0 path is exact here.
    lam_t = lam_eff.astype(batch.dtype)
    onehot = jax.nn.one_hot(target.astype(jnp.int32), num_classes, dtype=batch.dtype)
    onehot_rolled = jnp.roll(onehot, 1, axis=0)
    out_t = onehot_rolled + lam_t * (onehot - onehot_rolled)

    return out_x.reshape(B, C, H, W), out_t


def sample_effective_lambda(key, p=P, alpha=ALPHA):
    """Fold the `torch.rand(1) >= p` skip branch into lambda: lam=1.0 means 'no mixup'."""
    k_apply, k_beta = jax.random.split(key)
    u = jax.random.uniform(k_apply, ())
    lam_beta = jax.random.beta(k_beta, alpha, alpha)  # Dirichlet([a,a])[0] == Beta(a,a)
    return jnp.where(u < p, lam_beta, jnp.float32(1.0)).astype(jnp.float32)


if __name__ == "__main__":
    key = jax.random.PRNGKey(0)
    k_x, k_t, k_rand = jax.random.split(key, 3)

    B, C, H, W = 2, 4, 16, 16
    batch = jax.random.normal(k_x, (B, C, H, W), dtype=jnp.float32)
    # torch expects int64 targets; JAX default int is int32 — semantics identical here.
    target = jax.random.randint(k_t, (B,), 0, NUM_CLASSES, dtype=jnp.int32)

    lam_eff = sample_effective_lambda(k_rand)

    # Pure-JAX reference, computed BEFORE the call (batch is donated to the kernel).
    lam = lam_eff.astype(batch.dtype)
    onehot = jax.nn.one_hot(target, NUM_CLASSES, dtype=batch.dtype)
    ref_x = lam * batch + (1.0 - lam) * jnp.roll(batch, 1, axis=0)
    ref_t = lam * onehot + (1.0 - lam) * jnp.roll(onehot, 1, axis=0)
    ref_x, ref_t = jax.block_until_ready((ref_x, ref_t))

    mixed_batch, mixed_target = random_mixup(batch, target, lam_eff)
    jax.block_until_ready((mixed_batch, mixed_target))

    assert mixed_batch.shape == (B, C, H, W)
    assert mixed_target.shape == (B, NUM_CLASSES)
    assert jnp.allclose(mixed_batch, ref_x, atol=1e-6), "batch mismatch"
    assert jnp.allclose(mixed_target, ref_t, atol=1e-6), "target mismatch"

    print("KERNEL_OK")
</pallas_src>

<mosaic_0001>
module attributes {stable_mosaic.version = 11 : i64} {
  func.func @_mixup_image_kernel(%arg0: i32, %arg1: memref<1xf32, #tpu.memory_space<smem>>, %arg2: memref<2x512xf32, #tpu.memory_space<vmem>>, %arg3: memref<2x512xf32, #tpu.memory_space<vmem>>) attributes {dimension_semantics = [#tpu.dimension_semantics<parallel>], iteration_bounds = array<i64: 2>, scalar_prefetch = 0 : i64, scratch_operands = 0 : i64, tpu.core_type = #tpu.core_type<tc>, window_params = [{transform_indices = @transform_0, window_bounds = array<i64: 1>}, {transform_indices = @transform_1, window_bounds = array<i64: 2, 512>}, {transform_indices = @transform_2, window_bounds = array<i64: 2, 512>}]} {
    %c0 = arith.constant 0 : index
    %0 = memref.load %arg1[%c0] : memref<1xf32, #tpu.memory_space<smem>>
    %cst = arith.constant 1.000000e+00 : f32
    %1 = arith.cmpf oeq, %0, %cst : f32
    %2 = arith.extui %1 : i1 to i32
    %c0_i32 = arith.constant 0 : i32
    %3 = arith.cmpi ne, %2, %c0_i32 : i32
    scf.if %3 {
      %c0_2 = arith.constant 0 : index
      %c0_3 = arith.constant 0 : index
      %7 = vector.load %arg2[%c0_2, %c0_3] : memref<2x512xf32, #tpu.memory_space<vmem>>, vector<2x512xf32>
      %c0_4 = arith.constant 0 : index
      %c0_5 = arith.constant 0 : index
      %8 = vector.load %arg3[%c0_4, %c0_5] : memref<2x512xf32, #tpu.memory_space<vmem>>, vector<2x512xf32>
      tpu.vector_store %arg3[%c0_4, %c0_5], %7 {strides = array<i32>} : memref<2x512xf32, #tpu.memory_space<vmem>>, vector<2x512xf32>,
    } else {
    }
    %cst_0 = arith.constant 1.000000e+00 : f32
    %4 = arith.cmpf one, %0, %cst_0 : f32
    %5 = arith.extui %4 : i1 to i32
    %c0_i32_1 = arith.constant 0 : i32
    %6 = arith.cmpi ne, %5, %c0_i32_1 : i32
    scf.if %6 {
      %c0_2 = arith.constant 0 : index
      %c0_3 = arith.constant 0 : index
      %7 = vector.load %arg2[%c0_2, %c0_3] : memref<2x512xf32, #tpu.memory_space<vmem>>, vector<2x512xf32>
      %c1_i32 = arith.constant 1 : i32
      %8 = tpu.dynamic_rotate %7 by %c1_i32 dim 0 : vector<2x512xf32>, i32 -> vector<2x512xf32>
      %9 = arith.subf %7, %8 : vector<2x512xf32>
      %10 = vector.broadcast %0 : f32 to vector<2x512xf32>
      %11 = arith.mulf %10, %9 : vector<2x512xf32>
      %12 = arith.addf %8, %11 : vector<2x512xf32>
      %c0_4 = arith.constant 0 : index
      %c0_5 = arith.constant 0 : index
      %13 = vector.load %arg3[%c0_4, %c0_5] : memref<2x512xf32, #tpu.memory_space<vmem>>, vector<2x512xf32>
      tpu.vector_store %arg3[%c0_4, %c0_5], %12 {strides = array<i32>} : memref<2x512xf32, #tpu.memory_space<vmem>>, vector<2x512xf32>,
    } else {
    }
    return
  }
  func.func @transform_0(%arg0: i32) -> i32 {
    %c0_i32 = arith.constant 0 : i32
    %c0_i32_0 = arith.constant 0 : i32
    return %c0_i32 : i32
  }
  func.func @transform_1(%arg0: i32) -> (i32, i32) {
    %c0_i32 = arith.constant 0 : i32
    %c0_i32_0 = arith.constant 0 : i32
    return %c0_i32, %arg0 : i32, i32
  }
  func.func @transform_2(%arg0: i32) -> (i32, i32) {
    %c0_i32 = arith.constant 0 : i32
    %c0_i32_0 = arith.constant 0 : i32
    return %c0_i32, %arg0 : i32, i32
  }
}

</mosaic_0001>

<bundles_post_ra>
// kernel: random_mixup.1
= control target key start
LH: loop header
LB: loop body
LE: loop exit
PB: predicated region body
PF: predicated region fallthrough
CT: control target
= control target key end

     0   :  { %s400_s11 = smov 0   ;;  %s442_s0 = inlined_call_operand.<no memory space> [shape: f32[1], index: 0, kind: input, shape index: {}]   ;;  %s443_s1 = inlined_call_operand.vmem [shape: f32[2,1024], index: 1, kind: input, shape index: {}, may-alias: {1,2}]   ;;  %s444_s2 = inlined_call_operand.vmem [shape: f32[2,1024], index: 2, kind: output, shape index: {}, may-alias: {1,2}]  }
   0x1   :  { %7 = sst [smem:[#allocation2]] %s442_s0 }
   0x2 LB: > { %s350_s12 = sadd.s32 4294967295, %s379_s11   ;;  %p354_p0 = scmp.ge.s32.totalorder %s379_s11, 1  ;;  %s379_s11 = sphi %s400_s11, %s13_s11  }
   0x3   : > { %p114_p1 = scmp.lt.s32.totalorder %s379_s11, 3 }
   0x5   : > { %p115_p2 = pnand %p354_p0, %p114_p1 }
   0x6   : > { %s355_s13 = sshll.u32 (!%p115_p2), %s350_s12, 2  ;;  %s408_s14 = sld [smem:[#allocation2]] (!%p115_p2) }
   0x7   : > { %118 = sbr.rel (%p115_p2) target bundleno = 71 (0x47), region = 28  ;;  %p137_p3 = scmp.lt.s32.totalorder (!%p115_p2), %s355_s13, 7 }
   0xc   : > { %s448_s13 = smov (!%p137_p3, %s355_s13), 7  ;;  %p149_p4 = scmp.eq.f32.partialorder %s408_s14, 1.0 }
   0xd   : > { %s356_s0 = sshll.u32 %s448_s13, 1 }
   0xe   : > { %s140_s17 = scalar_lea.vmem %s443_s1, %s356_s0  ;;  %s416_s20 = scalar_lea.vmem %s444_s2, %s356_s0 }
   0xf   : > { %152 = sbr.rel (!%p149_p4) target bundleno = 20 (0x14), region = 32  ;;  %v153_v0 = vld [vmem:[%s140_s17] sm:$0xff] (%p149_p4) }
  0x10   : > { %154 = vst [vmem:[%s416_s20] sm:$0xff] (%p149_p4), %v153_v0 }
  0x14 PF: > { %p155_p5 = scmp.ne.f32.partialorder %s408_s14, 1.0 }
  0x15   : > { %v165_v2 = vlaneseq (%p155_p5)  ;;  %v381_v3 = vmov (%p155_p5), 1983009808   ;;  %vm182_vm0 = vcmask (%p155_p5), 1047554   ;;  %vm221_vm1 = vcmask (%p155_p5), 1040384  }
  0x16   : > { %158 = sbr.rel (!%p155_p5) target bundleno = 71 (0x47), region = 36  ;;  %v163_v4 = vunpack.c.l.s4 (%p155_p5), %v381_v3  ;;  %vm222_vm2 = vcmask (%p155_p5), 1042434   ;;  %vm224_vm4 = vcmask (%p155_p5), 1044484   ;;  %vm226_vm6 = vcmask (%p155_p5), 1046534  }
  0x17   : > { %v159_v1 = vld [vmem:[%s140_s17] sm:$0xff] (%p155_p5)  ;;  %v166_v5 = vshrl.u32 (%p155_p5), %v165_v2, 7  ;;  %vm223_vm3 = vmor (%p155_p5), %vm221_vm1, %vm222_vm2  ;;  %v234_v39 = vstv (%p155_p5), %s408_s14 }
  0x18   : > { %v161_v6 = vcombine.high (%p155_p5), %v159_v1, %v159_v1  ;;  %v164_v7 = vunpack.c.0.s8 (%p155_p5), %v163_v4  ;;  %vm225_vm5 = vmor (%p155_p5), %vm223_vm3, %vm224_vm4 }
  0x19   : > { %vm429_vm7 = vmor (%p155_p5), %vm225_vm5, %vm226_vm6 }
  0x1a   : > { %v167_v8 = vsub.s32 (%p155_p5), %v164_v7, %v166_v5 }
  0x1c   : > { %v168_v9 = vrot.slane %v159_v1, %v167_v8  ;;  %v175_v10 = vrot.slane %v161_v6, %v167_v8 }
  0x1e   : > { %v176_v11 = vcombine.high %v168_v9, %v168_v9  ;;  %v177_v12 = vcombine.high %v175_v10, %v175_v10  ;;  %v183_v13 = vrot.slane %v168_v9, 6  ;;  %v187_v14 = vrot.slane %v175_v10, 6 }
  0x20   : > { %v184_v15 = vsel %vm182_vm0, %v183_v13, %v168_v9  ;;  %v185_v16 = vrot.slane %v176_v11, 6  ;;  %v188_v17 = vsel %vm182_vm0, %v187_v14, %v175_v10  ;;  %v189_v18 = vrot.slane %v177_v12, 6 }
  0x21   : > { %v191_v19 = vrot.slane %v184_v15, 6  ;;  %v193_v20 = vrot.slane %v188_v17, 6 }
  0x22   : > { %v186_v21 = vsel %vm182_vm0, %v185_v16, %v176_v11  ;;  %v190_v22 = vsel %vm182_vm0, %v189_v18, %v177_v12 }
  0x23   : > { %v192_v23 = vrot.slane %v186_v21, 6  ;;  %v194_v24 = vrot.slane %v190_v22, 6  ;;  %v195_v25 = vsel %vm182_vm0, %v191_v19, %v168_v9  ;;  %v197_v26 = vsel %vm182_vm0, %v193_v20, %v175_v10 }
  0x25   : > { %v196_v27 = vsel %vm182_vm0, %v192_v23, %v176_v11  ;;  %v198_v28 = vsel %vm182_vm0, %v194_v24, %v177_v12 }
  0x26   : > { %v203_v29 = vcombine.low %v195_v25, %v196_v27  ;;  %v204_v30 = vcombine.low %v197_v26, %v198_v28 }
  0x28   : > { %v211_v31 = vrot.slane %v203_v29, %v167_v8  ;;  %v218_v32 = vrot.slane %v204_v30, %v167_v8 }
  0x2a   : > { %v219_v33 = vcombine.low %v211_v31, %v218_v32  ;;  %v220_v34 = vcombine.high %v211_v31, %v218_v32 }
  0x2c   : > { %v359_v36 = vrot.slane %v219_v33, 9  ;;  %v230_v37 = vrot.slane %v220_v34, 7 }
  0x2e   : > { %v231_v38 = vsel %vm429_vm7, %v359_v36, %v230_v37 }
  0x2f   : > { %v233_v40 = vsub.f32 %v159_v1, %v231_v38 }
  0x31   : > { %v235_v41 = vmul.f32 %v234_v39, %v233_v40 }
  0x33   : > { %v237_v42 = vcombine.high %v235_v41, %v235_v41  ;;  %v244_v43 = vrot.slane %v235_v41, %v167_v8 }
  0x35   : > { %v251_v44 = vrot.slane %v237_v42, %v167_v8  ;;  %v252_v45 = vcombine.high %v244_v43, %v244_v43  ;;  %v254_v46 = vrot.slane %v244_v43, 7 }
  0x37   : > { %v253_v47 = vcombine.high %v251_v44, %v251_v44  ;;  %v255_v48 = vrot.slane %v252_v45, 7  ;;  %v256_v49 = vrot.slane %v251_v44, 7  ;;  %v262_v50 = vadd.f32 %v254_v46, %v195_v25 }
  0x39   : > { %v257_v51 = vrot.slane %v253_v47, 7  ;;  %v263_v52 = vadd.f32 %v255_v48, %v196_v27  ;;  %v264_v53 = vadd.f32 %v256_v49, %v197_v26 }
  0x3b   : > { %v265_v54 = vadd.f32 %v257_v51, %v198_v28  ;;  %v270_v55 = vcombine.low %v262_v50, %v263_v52 }
  0x3d   : > { %v271_v56 = vcombine.low %v264_v53, %v265_v54  ;;  %v278_v57 = vrot.slane %v270_v55, %v167_v8 }
  0x3f   : > { %v285_v58 = vrot.slane %v271_v56, %v167_v8 }
  0x41   : > { %v286_v59 = vcombine.low %v278_v57, %v285_v58  ;;  %v287_v60 = vcombine.high %v278_v57, %v285_v58 }
  0x43   : > { %v360_v61 = vrot.slane %v286_v59, 9  ;;  %v290_v62 = vrot.slane %v287_v60, 7 }
  0x45   : > { %v291_v63 = vsel %vm429_vm7, %v360_v61, %v290_v62 }
  0x46   : > { %293 = vst [vmem:[%s416_s20] sm:$0xff] %v291_v63 }
  0x47 PF: > { %s13_s11 = sadd.s32 1, %s379_s11  }
  0x48   : > { %p10_p6 = scmp.ge.s32.totalorder %s13_s11, 4  }
  0x4a   :  { %12 = sbr.rel (!%p10_p6) target bundleno = 2 (0x2), region = 66 }

</bundles_post_ra>
